<compile_context>
chip_gen: v7x
topology: tpu7x:2x2x1
jax: 0.10.0
libtpu: 0.0.40
codegen_flags: <defaults>
</compile_context>

<pallas_src>
import jax
import jax.numpy as jnp
from jax import lax
from jax.experimental import pallas as pl
from jax.experimental.pallas import tpu as pltpu


# ---------------------------------------------------------------------------
# Fused bidirectional-RNN + projection kernel (grid-less, VMEM-resident).
# ---------------------------------------------------------------------------
def _make_birnn_proj_kernel(T, B, H):
    H2 = 2 * H

    def kernel(x_ref,      # [T*B, 2E]  row (t,b); lanes = [emb(t) | emb(T-1-t)]
               wih_ref,    # [2E, 2H]   block-diag(Wih_f, Wih_b)
               bih_ref,    # [1, 2H]    [b_ih_f+b_hh_f | b_ih_b+b_hh_b]
               whh_ref,    # [2H, 2H]   block-diag(Whh_f, Whh_b)
               wpf_ref,    # [H, O]     proj weight rows for the forward half
               wpb_ref,    # [H, O]     proj weight rows for the backward half
               bp_ref,     # [1, O]     proj bias
               y_ref,      # [T*B, O]   output (time-major, flattened)
               u_s,        # VMEM [T*B, 2H] precomputed input projections
               hf_s,       # VMEM [T*B, H]  forward hidden states (output time)
               hb_s):      # VMEM [T*B, H]  backward hidden states (output time)
        # ---- Phase 1: one big MXU matmul computes every input projection for
        # both directions (backward half already time-reversed via x layout).
        u_s[...] = (jnp.dot(x_ref[...], wih_ref[...],
                            preferred_element_type=jnp.float32)
                    + bih_ref[...])

        # ---- Phase 2: the serial recurrence.  Both directions advance
        # together: one block-diagonal (B, 2H) @ (2H, 2H) matmul + tanh / step.
        whh = whh_ref[...]

        def step(s, h):
            row = pl.multiple_of(s * B, B)
            u = u_s[pl.ds(row, B), :]
            h_new = jnp.tanh(
                u + jnp.dot(h, whh, preferred_element_type=jnp.float32))
            # Forward hidden belongs to output time s; backward hidden to
            # output time T-1-s (PyTorch bidirectional ordering).  Stores are
            # off the recurrence dependency chain.
            hf_s[pl.ds(row, B), :] = h_new[:, :H]
            rrow = pl.multiple_of((T - 1 - s) * B, B)
            hb_s[pl.ds(rrow, B), :] = h_new[:, H:]
            return h_new

        # Full unroll is fine at small T; cap (e.g. 8) for long sequences.
        unroll = True if T <= 32 else 8
        lax.fori_loop(0, T, step, jnp.zeros((B, H2), jnp.float32),
                      unroll=unroll)

        # ---- Phase 3: fused output projection — two big matmuls and one big
        # contiguous store (no per-step masked stores).
        y_ref[...] = (jnp.dot(hf_s[...], wpf_ref[...],
                              preferred_element_type=jnp.float32)
                      + jnp.dot(hb_s[...], wpb_ref[...],
                                preferred_element_type=jnp.float32)
                      + bp_ref[...])

    return kernel


def birnn_proj(x2, wih_blk, bih, whh_blk, wp_f, wp_b, bp, *, T, B, H):
    """x2: [T*B, 2E]  ->  y: [T*B, O] (projected bidirectional hidden states)."""
    TB = x2.shape[0]
    O = wp_f.shape[1]

    # Explicit scoped-VMEM budget (everything here is tiny; 16 MiB is safe on
    # v5e/v6e/v7x and far above the actual residency of this problem size).
    vmem_bytes = 16 * 1024 * 1024

    return pl.pallas_call(
        _make_birnn_proj_kernel(T, B, H),
        out_shape=jax.ShapeDtypeStruct((TB, O), jnp.float32),
        scratch_shapes=[
            pltpu.VMEM((TB, 2 * H), jnp.float32),   # u  : input projections
            pltpu.VMEM((TB, H), jnp.float32),       # hf : forward hidden
            pltpu.VMEM((TB, H), jnp.float32),       # hb : backward hidden
        ],
        compiler_params=pltpu.CompilerParams(vmem_limit_bytes=vmem_bytes),
    )(x2, wih_blk, bih, whh_blk, wp_f, wp_b, bp)


# ---------------------------------------------------------------------------
# Full model wrapper.  Embedding lookup and parameter re-packing are plain-JAX
# glue; all sequence compute runs in the fused Pallas kernel.
# ---------------------------------------------------------------------------
def rnn_forward(tokens, params):
    """tokens: [B, T] int32 -> [B, T, output_size] float32."""
    B, T = tokens.shape
    E = params["wih_f"].shape[0]
    H = params["whh_f"].shape[0]
    O = params["w_proj"].shape[1]

    # TODO(synk): embedding gather stays in plain JAX (data-dependent gather).
    emb = params["embedding"][tokens.T]                # time-major [T, B, E]
    # Forward lanes see emb(t), backward lanes see emb(T-1-t): the backward
    # direction's time reversal happens here, off the serial kernel.
    x_cat = jnp.concatenate([emb, emb[::-1]], axis=-1)  # [T, B, 2E]
    x2 = x_cat.reshape(T * B, 2 * E)

    # Parameter packing (cheap; could be hoisted out of jit if desired).
    zE = jnp.zeros((E, H), jnp.float32)
    wih_blk = jnp.block([[params["wih_f"], zE],
                         [zE, params["wih_b"]]])        # [2E, 2H]
    zH = jnp.zeros((H, H), jnp.float32)
    whh_blk = jnp.block([[params["whh_f"], zH],
                         [zH, params["whh_b"]]])        # [2H, 2H]
    bih = jnp.concatenate([params["b_f"], params["b_b"]], axis=-1)  # [1, 2H]
    wp_f = params["w_proj"][:H]                         # [H, O]
    wp_b = params["w_proj"][H:]                         # [H, O]

    y2 = birnn_proj(x2, wih_blk, bih, whh_blk, wp_f, wp_b,
                    params["b_proj"], T=T, B=B, H=H)    # [T*B, O]
    return y2.reshape(T, B, O).transpose(1, 0, 2)       # [B, T, O]


# ---------------------------------------------------------------------------
# Plain-JAX reference (mirrors PyTorch bidirectional nn.RNN + Linear).
# ---------------------------------------------------------------------------
def rnn_reference(tokens, params):
    x = params["embedding"][tokens]                    # [B, T, E]
    B, T, _ = x.shape
    H = params["whh_f"].shape[0]
    hf = jnp.zeros((B, H), jnp.float32)
    hb = jnp.zeros((B, H), jnp.float32)
    fwd = [None] * T
    bwd = [None] * T
    for t in range(T):
        hf = jnp.tanh(x[:, t] @ params["wih_f"] + hf @ params["whh_f"]
                      + params["b_f"])
        fwd[t] = hf
    for t in range(T - 1, -1, -1):
        hb = jnp.tanh(x[:, t] @ params["wih_b"] + hb @ params["whh_b"]
                      + params["b_b"])
        bwd[t] = hb
    h = jnp.stack([jnp.concatenate([fwd[t], bwd[t]], axis=-1)
                   for t in range(T)], axis=1)          # [B, T, 2H]
    return h @ params["w_proj"] + params["b_proj"]      # [B, T, O]


def init_params(key, vocab=20, embed_dim=32, hidden=32, output_size=16):
    keys = jax.random.split(key, 12)
    s = 0.1

    def r(k, shape):
        return s * jax.random.normal(k, shape, dtype=jnp.float32)

    # nn.RNN parameters, pre-transposed so the kernel does x @ W (W is [in, out]).
    # bias_ih and bias_hh are summed (tanh(xW^T + b_ih + hW^T + b_hh)).
    return {
        "embedding": r(keys[0], (vocab, embed_dim)),
        "wih_f": r(keys[1], (embed_dim, hidden)),
        "whh_f": r(keys[2], (hidden, hidden)),
        "b_f": r(keys[3], (1, hidden)) + r(keys[4], (1, hidden)),
        "wih_b": r(keys[5], (embed_dim, hidden)),
        "whh_b": r(keys[6], (hidden, hidden)),
        "b_b": r(keys[7], (1, hidden)) + r(keys[8], (1, hidden)),
        "w_proj": r(keys[9], (2 * hidden, output_size)),
        "b_proj": r(keys[10], (1, output_size)),
    }


if __name__ == "__main__":
    B, T = 2, 8
    VOCAB, E, H, O = 20, 32, 32, 16

    key = jax.random.PRNGKey(0)
    k_tok, k_par = jax.random.split(key)
    tokens = jax.random.randint(k_tok, (B, T), 0, VOCAB, dtype=jnp.int32)
    params = init_params(k_par, vocab=VOCAB, embed_dim=E, hidden=H,
                         output_size=O)

    out = jax.jit(rnn_forward)(tokens, params)
    out = jax.block_until_ready(out)
    assert out.shape == (B, T, O), out.shape
    assert out.dtype == jnp.float32

    ref = rnn_reference(tokens, params)
    max_err = float(jnp.max(jnp.abs(out - ref)))
    assert jnp.allclose(out, ref, atol=1e-4, rtol=1e-4), max_err

    print("KERNEL_OK")
</pallas_src>

<mosaic_0001>
module attributes {stable_mosaic.version = 11 : i64} {
  func.func @kernel(%arg0: memref<16x64xf32, #tpu.memory_space<vmem>>, %arg1: memref<64x64xf32, #tpu.memory_space<vmem>>, %arg2: memref<1x64xf32, #tpu.memory_space<vmem>>, %arg3: memref<64x64xf32, #tpu.memory_space<vmem>>, %arg4: memref<32x16xf32, #tpu.memory_space<vmem>>, %arg5: memref<32x16xf32, #tpu.memory_space<vmem>>, %arg6: memref<1x16xf32, #tpu.memory_space<vmem>>, %arg7: memref<16x16xf32, #tpu.memory_space<vmem>>, %arg8: memref<16x64xf32, #tpu.memory_space<vmem>>, %arg9: memref<16x32xf32, #tpu.memory_space<vmem>>, %arg10: memref<16x32xf32, #tpu.memory_space<vmem>>) attributes {dimension_semantics = [], scalar_prefetch = 0 : i64, scratch_operands = 3 : i64, tpu.core_type = #tpu.core_type<tc>} {
    %c0 = arith.constant 0 : index
    %c0_0 = arith.constant 0 : index
    %0 = vector.load %arg0[%c0, %c0_0] : memref<16x64xf32, #tpu.memory_space<vmem>>, vector<16x64xf32>
    %c0_1 = arith.constant 0 : index
    %c0_2 = arith.constant 0 : index
    %1 = vector.load %arg1[%c0_1, %c0_2] : memref<64x64xf32, #tpu.memory_space<vmem>>, vector<64x64xf32>
    %cst = arith.constant dense<0.000000e+00> : vector<16x64xf32>
    %2 = tpu.matmul %0, %1, %cst {dimension_numbers = #tpu.dot_dimension_numbers<[1], [0], [0], [1], [0, 0, 1, 1], [], []>} : vector<16x64xf32>, vector<64x64xf32>, vector<16x64xf32> -> vector<16x64xf32>
    %c0_3 = arith.constant 0 : index
    %c0_4 = arith.constant 0 : index
    %3 = vector.load %arg2[%c0_3, %c0_4] : memref<1x64xf32, #tpu.memory_space<vmem>>, vector<1x64xf32>
    %4 = vector.broadcast %3 : vector<1x64xf32> to vector<16x64xf32>
    %5 = arith.addf %2, %4 : vector<16x64xf32>
    %c0_5 = arith.constant 0 : index
    %c0_6 = arith.constant 0 : index
    %6 = vector.load %arg8[%c0_5, %c0_6] : memref<16x64xf32, #tpu.memory_space<vmem>>, vector<16x64xf32>
    tpu.vector_store %arg8[%c0_5, %c0_6], %5 {strides = array<i32>} : memref<16x64xf32, #tpu.memory_space<vmem>>, vector<16x64xf32>,
    %c0_7 = arith.constant 0 : index
    %c0_8 = arith.constant 0 : index
    %7 = vector.load %arg3[%c0_7, %c0_8] : memref<64x64xf32, #tpu.memory_space<vmem>>, vector<64x64xf32>
    %cst_9 = arith.constant 0.000000e+00 : f32
    %8 = vector.broadcast %cst_9 : f32 to vector<2x64xf32>
    %c0_i32 = arith.constant 0 : i32
    %c2_i32 = arith.constant 2 : i32
    %9 = arith.muli %c0_i32, %c2_i32 : i32
    %10 = tpu.assume_multiple %9, 2 : i32
    %11 = arith.index_cast %10 : i32 to index
    %c0_10 = arith.constant 0 : index
    %12 = vector.load %arg8[%11, %c0_10] : memref<16x64xf32, #tpu.memory_space<vmem>>, vector<2x64xf32>
    %cst_11 = arith.constant dense<0.000000e+00> : vector<2x64xf32>
    %13 = tpu.matmul %8, %7, %cst_11 {dimension_numbers = #tpu.dot_dimension_numbers<[1], [0], [0], [1], [0, 0, 1, 1], [], []>} : vector<2x64xf32>, vector<64x64xf32>, vector<2x64xf32> -> vector<2x64xf32>
    %14 = arith.addf %12, %13 : vector<2x64xf32>
    %15 = math.tanh %14 : vector<2x64xf32>
    %16 = vector.extract_strided_slice %15 {offsets = [0, 0], sizes = [2, 32], strides = [1, 1]} : vector<2x64xf32> to vector<2x32xf32>
    %17 = arith.index_cast %10 : i32 to index
    %c0_12 = arith.constant 0 : index
    %18 = vector.load %arg9[%17, %c0_12] : memref<16x32xf32, #tpu.memory_space<vmem>>, vector<2x32xf32>
    tpu.vector_store %arg9[%17, %c0_12], %16 {strides = array<i32>} : memref<16x32xf32, #tpu.memory_space<vmem>>, vector<2x32xf32>,
    %c7_i32 = arith.constant 7 : i32
    %19 = arith.subi %c7_i32, %c0_i32 : i32
    %c2_i32_13 = arith.constant 2 : i32
    %20 = arith.muli %19, %c2_i32_13 : i32
    %21 = tpu.assume_multiple %20, 2 : i32
    %22 = vector.extract_strided_slice %15 {offsets = [0, 32], sizes = [2, 32], strides = [1, 1]} : vector<2x64xf32> to vector<2x32xf32>
    %23 = arith.index_cast %21 : i32 to index
    %c0_14 = arith.constant 0 : index
    %24 = vector.load %arg10[%23, %c0_14] : memref<16x32xf32, #tpu.memory_space<vmem>>, vector<2x32xf32>
    tpu.vector_store %arg10[%23, %c0_14], %22 {strides = array<i32>} : memref<16x32xf32, #tpu.memory_space<vmem>>, vector<2x32xf32>,
    %c1_i32 = arith.constant 1 : i32
    %c2_i32_15 = arith.constant 2 : i32
    %25 = arith.muli %c1_i32, %c2_i32_15 : i32
    %26 = tpu.assume_multiple %25, 2 : i32
    %27 = arith.index_cast %26 : i32 to index
    %c0_16 = arith.constant 0 : index
    %28 = vector.load %arg8[%27, %c0_16] : memref<16x64xf32, #tpu.memory_space<vmem>>, vector<2x64xf32>
    %cst_17 = arith.constant dense<0.000000e+00> : vector<2x64xf32>
    %29 = tpu.matmul %15, %7, %cst_17 {dimension_numbers = #tpu.dot_dimension_numbers<[1], [0], [0], [1], [0, 0, 1, 1], [], []>} : vector<2x64xf32>, vector<64x64xf32>, vector<2x64xf32> -> vector<2x64xf32>
    %30 = arith.addf %28, %29 : vector<2x64xf32>
    %31 = math.tanh %30 : vector<2x64xf32>
    %32 = vector.extract_strided_slice %31 {offsets = [0, 0], sizes = [2, 32], strides = [1, 1]} : vector<2x64xf32> to vector<2x32xf32>
    %33 = arith.index_cast %26 : i32 to index
    %c0_18 = arith.constant 0 : index
    %34 = vector.load %arg9[%33, %c0_18] : memref<16x32xf32, #tpu.memory_space<vmem>>, vector<2x32xf32>
    tpu.vector_store %arg9[%33, %c0_18], %32 {strides = array<i32>} : memref<16x32xf32, #tpu.memory_space<vmem>>, vector<2x32xf32>,
    %c7_i32_19 = arith.constant 7 : i32
    %35 = arith.subi %c7_i32_19, %c1_i32 : i32
    %c2_i32_20 = arith.constant 2 : i32
    %36 = arith.muli %35, %c2_i32_20 : i32
    %37 = tpu.assume_multiple %36, 2 : i32
    %38 = vector.extract_strided_slice %31 {offsets = [0, 32], sizes = [2, 32], strides = [1, 1]} : vector<2x64xf32> to vector<2x32xf32>
    %39 = arith.index_cast %37 : i32 to index
    %c0_21 = arith.constant 0 : index
    %40 = vector.load %arg10[%39, %c0_21] : memref<16x32xf32, #tpu.memory_space<vmem>>, vector<2x32xf32>
    tpu.vector_store %arg10[%39, %c0_21], %38 {strides = array<i32>} : memref<16x32xf32, #tpu.memory_space<vmem>>, vector<2x32xf32>,
    %c2_i32_22 = arith.constant 2 : i32
    %c2_i32_23 = arith.constant 2 : i32
    %41 = arith.muli %c2_i32_22, %c2_i32_23 : i32
    %42 = tpu.assume_multiple %41, 2 : i32
    %43 = arith.index_cast %42 : i32 to index
    %c0_24 = arith.constant 0 : index
    %44 = vector.load %arg8[%43, %c0_24] : memref<16x64xf32, #tpu.memory_space<vmem>>, vector<2x64xf32>
    %cst_25 = arith.constant dense<0.000000e+00> : vector<2x64xf32>
    %45 = tpu.matmul %31, %7, %cst_25 {dimension_numbers = #tpu.dot_dimension_numbers<[1], [0], [0], [1], [0, 0, 1, 1], [], []>} : vector<2x64xf32>, vector<64x64xf32>, vector<2x64xf32> -> vector<2x64xf32>
    %46 = arith.addf %44, %45 : vector<2x64xf32>
    %47 = math.tanh %46 : vector<2x64xf32>
    %48 = vector.extract_strided_slice %47 {offsets = [0, 0], sizes = [2, 32], strides = [1, 1]} : vector<2x64xf32> to vector<2x32xf32>
    %49 = arith.index_cast %42 : i32 to index
    %c0_26 = arith.constant 0 : index
    %50 = vector.load %arg9[%49, %c0_26] : memref<16x32xf32, #tpu.memory_space<vmem>>, vector<2x32xf32>
    tpu.vector_store %arg9[%49, %c0_26], %48 {strides = array<i32>} : memref<16x32xf32, #tpu.memory_space<vmem>>, vector<2x32xf32>,
    %c7_i32_27 = arith.constant 7 : i32
    %51 = arith.subi %c7_i32_27, %c2_i32_22 : i32
    %c2_i32_28 = arith.constant 2 : i32
    %52 = arith.muli %51, %c2_i32_28 : i32
    %53 = tpu.assume_multiple %52, 2 : i32
    %54 = vector.extract_strided_slice %47 {offsets = [0, 32], sizes = [2, 32], strides = [1, 1]} : vector<2x64xf32> to vector<2x32xf32>
    %55 = arith.index_cast %53 : i32 to index
    %c0_29 = arith.constant 0 : index
    %56 = vector.load %arg10[%55, %c0_29] : memref<16x32xf32, #tpu.memory_space<vmem>>, vector<2x32xf32>
    tpu.vector_store %arg10[%55, %c0_29], %54 {strides = array<i32>} : memref<16x32xf32, #tpu.memory_space<vmem>>, vector<2x32xf32>,
    %c3_i32 = arith.constant 3 : i32
    %c2_i32_30 = arith.constant 2 : i32
    %57 = arith.muli %c3_i32, %c2_i32_30 : i32
    %58 = tpu.assume_multiple %57, 2 : i32
    %59 = arith.index_cast %58 : i32 to index
    %c0_31 = arith.constant 0 : index
    %60 = vector.load %arg8[%59, %c0_31] : memref<16x64xf32, #tpu.memory_space<vmem>>, vector<2x64xf32>
    %cst_32 = arith.constant dense<0.000000e+00> : vector<2x64xf32>
    %61 = tpu.matmul %47, %7, %cst_32 {dimension_numbers = #tpu.dot_dimension_numbers<[1], [0], [0], [1], [0, 0, 1, 1], [], []>} : vector<2x64xf32>, vector<64x64xf32>, vector<2x64xf32> -> vector<2x64xf32>
    %62 = arith.addf %60, %61 : vector<2x64xf32>
    %63 = math.tanh %62 : vector<2x64xf32>
    %64 = vector.extract_strided_slice %63 {offsets = [0, 0], sizes = [2, 32], strides = [1, 1]} : vector<2x64xf32> to vector<2x32xf32>
    %65 = arith.index_cast %58 : i32 to index
    %c0_33 = arith.constant 0 : index
    %66 = vector.load %arg9[%65, %c0_33] : memref<16x32xf32, #tpu.memory_space<vmem>>, vector<2x32xf32>
    tpu.vector_store %arg9[%65, %c0_33], %64 {strides = array<i32>} : memref<16x32xf32, #tpu.memory_space<vmem>>, vector<2x32xf32>,
    %c7_i32_34 = arith.constant 7 : i32
    %67 = arith.subi %c7_i32_34, %c3_i32 : i32
    %c2_i32_35 = arith.constant 2 : i32
    %68 = arith.muli %67, %c2_i32_35 : i32
    %69 = tpu.assume_multiple %68, 2 : i32
    %70 = vector.extract_strided_slice %63 {offsets = [0, 32], sizes = [2, 32], strides = [1, 1]} : vector<2x64xf32> to vector<2x32xf32>
    %71 = arith.index_cast %69 : i32 to index
    %c0_36 = arith.constant 0 : index
    %72 = vector.load %arg10[%71, %c0_36] : memref<16x32xf32, #tpu.memory_space<vmem>>, vector<2x32xf32>
    tpu.vector_store %arg10[%71, %c0_36], %70 {strides = array<i32>} : memref<16x32xf32, #tpu.memory_space<vmem>>, vector<2x32xf32>,
    %c4_i32 = arith.constant 4 : i32
    %c2_i32_37 = arith.constant 2 : i32
    %73 = arith.muli %c4_i32, %c2_i32_37 : i32
    %74 = tpu.assume_multiple %73, 2 : i32
    %75 = arith.index_cast %74 : i32 to index
    %c0_38 = arith.constant 0 : index
    %76 = vector.load %arg8[%75, %c0_38] : memref<16x64xf32, #tpu.memory_space<vmem>>, vector<2x64xf32>
    %cst_39 = arith.constant dense<0.000000e+00> : vector<2x64xf32>
    %77 = tpu.matmul %63, %7, %cst_39 {dimension_numbers = #tpu.dot_dimension_numbers<[1], [0], [0], [1], [0, 0, 1, 1], [], []>} : vector<2x64xf32>, vector<64x64xf32>, vector<2x64xf32> -> vector<2x64xf32>
    %78 = arith.addf %76, %77 : vector<2x64xf32>
    %79 = math.tanh %78 : vector<2x64xf32>
    %80 = vector.extract_strided_slice %79 {offsets = [0, 0], sizes = [2, 32], strides = [1, 1]} : vector<2x64xf32> to vector<2x32xf32>
    %81 = arith.index_cast %74 : i32 to index
    %c0_40 = arith.constant 0 : index
    %82 = vector.load %arg9[%81, %c0_40] : memref<16x32xf32, #tpu.memory_space<vmem>>, vector<2x32xf32>
    tpu.vector_store %arg9[%81, %c0_40], %80 {strides = array<i32>} : memref<16x32xf32, #tpu.memory_space<vmem>>, vector<2x32xf32>,
    %c7_i32_41 = arith.constant 7 : i32
    %83 = arith.subi %c7_i32_41, %c4_i32 : i32
    %c2_i32_42 = arith.constant 2 : i32
    %84 = arith.muli %83, %c2_i32_42 : i32
    %85 = tpu.assume_multiple %84, 2 : i32
    %86 = vector.extract_strided_slice %79 {offsets = [0, 32], sizes = [2, 32], strides = [1, 1]} : vector<2x64xf32> to vector<2x32xf32>
    %87 = arith.index_cast %85 : i32 to index
    %c0_43 = arith.constant 0 : index
    %88 = vector.load %arg10[%87, %c0_43] : memref<16x32xf32, #tpu.memory_space<vmem>>, vector<2x32xf32>
    tpu.vector_store %arg10[%87, %c0_43], %86 {strides = array<i32>} : memref<16x32xf32, #tpu.memory_space<vmem>>, vector<2x32xf32>,
    %c5_i32 = arith.constant 5 : i32
    %c2_i32_44 = arith.constant 2 : i32
    %89 = arith.muli %c5_i32, %c2_i32_44 : i32
    %90 = tpu.assume_multiple %89, 2 : i32
    %91 = arith.index_cast %90 : i32 to index
    %c0_45 = arith.constant 0 : index
    %92 = vector.load %arg8[%91, %c0_45] : memref<16x64xf32, #tpu.memory_space<vmem>>, vector<2x64xf32>
    %cst_46 = arith.constant dense<0.000000e+00> : vector<2x64xf32>
    %93 = tpu.matmul %79, %7, %cst_46 {dimension_numbers = #tpu.dot_dimension_numbers<[1], [0], [0], [1], [0, 0, 1, 1], [], []>} : vector<2x64xf32>, vector<64x64xf32>, vector<2x64xf32> -> vector<2x64xf32>
    %94 = arith.addf %92, %93 : vector<2x64xf32>
    %95 = math.tanh %94 : vector<2x64xf32>
    %96 = vector.extract_strided_slice %95 {offsets = [0, 0], sizes = [2, 32], strides = [1, 1]} : vector<2x64xf32> to vector<2x32xf32>
    %97 = arith.index_cast %90 : i32 to index
    %c0_47 = arith.constant 0 : index
    %98 = vector.load %arg9[%97, %c0_47] : memref<16x32xf32, #tpu.memory_space<vmem>>, vector<2x32xf32>
    tpu.vector_store %arg9[%97, %c0_47], %96 {strides = array<i32>} : memref<16x32xf32, #tpu.memory_space<vmem>>, vector<2x32xf32>,
    %c7_i32_48 = arith.constant 7 : i32
    %99 = arith.subi %c7_i32_48, %c5_i32 : i32
    %c2_i32_49 = arith.constant 2 : i32
    %100 = arith.muli %99, %c2_i32_49 : i32
    %101 = tpu.assume_multiple %100, 2 : i32
    %102 = vector.extract_strided_slice %95 {offsets = [0, 32], sizes = [2, 32], strides = [1, 1]} : vector<2x64xf32> to vector<2x32xf32>
    %103 = arith.index_cast %101 : i32 to index
    %c0_50 = arith.constant 0 : index
    %104 = vector.load %arg10[%103, %c0_50] : memref<16x32xf32, #tpu.memory_space<vmem>>, vector<2x32xf32>
    tpu.vector_store %arg10[%103, %c0_50], %102 {strides = array<i32>} : memref<16x32xf32, #tpu.memory_space<vmem>>, vector<2x32xf32>,
    %c6_i32 = arith.constant 6 : i32
    %c2_i32_51 = arith.constant 2 : i32
    %105 = arith.muli %c6_i32, %c2_i32_51 : i32
    %106 = tpu.assume_multiple %105, 2 : i32
    %107 = arith.index_cast %106 : i32 to index
    %c0_52 = arith.constant 0 : index
    %108 = vector.load %arg8[%107, %c0_52] : memref<16x64xf32, #tpu.memory_space<vmem>>, vector<2x64xf32>
    %cst_53 = arith.constant dense<0.000000e+00> : vector<2x64xf32>
    %109 = tpu.matmul %95, %7, %cst_53 {dimension_numbers = #tpu.dot_dimension_numbers<[1], [0], [0], [1], [0, 0, 1, 1], [], []>} : vector<2x64xf32>, vector<64x64xf32>, vector<2x64xf32> -> vector<2x64xf32>
    %110 = arith.addf %108, %109 : vector<2x64xf32>
    %111 = math.tanh %110 : vector<2x64xf32>
    %112 = vector.extract_strided_slice %111 {offsets = [0, 0], sizes = [2, 32], strides = [1, 1]} : vector<2x64xf32> to vector<2x32xf32>
    %113 = arith.index_cast %106 : i32 to index
    %c0_54 = arith.constant 0 : index
    %114 = vector.load %arg9[%113, %c0_54] : memref<16x32xf32, #tpu.memory_space<vmem>>, vector<2x32xf32>
    tpu.vector_store %arg9[%113, %c0_54], %112 {strides = array<i32>} : memref<16x32xf32, #tpu.memory_space<vmem>>, vector<2x32xf32>,
    %c7_i32_55 = arith.constant 7 : i32
    %115 = arith.subi %c7_i32_55, %c6_i32 : i32
    %c2_i32_56 = arith.constant 2 : i32
    %116 = arith.muli %115, %c2_i32_56 : i32
    %117 = tpu.assume_multiple %116, 2 : i32
    %118 = vector.extract_strided_slice %111 {offsets = [0, 32], sizes = [2, 32], strides = [1, 1]} : vector<2x64xf32> to vector<2x32xf32>
    %119 = arith.index_cast %117 : i32 to index
    %c0_57 = arith.constant 0 : index
    %120 = vector.load %arg10[%119, %c0_57] : memref<16x32xf32, #tpu.memory_space<vmem>>, vector<2x32xf32>
    tpu.vector_store %arg10[%119, %c0_57], %118 {strides = array<i32>} : memref<16x32xf32, #tpu.memory_space<vmem>>, vector<2x32xf32>,
    %c7_i32_58 = arith.constant 7 : i32
    %c2_i32_59 = arith.constant 2 : i32
    %121 = arith.muli %c7_i32_58, %c2_i32_59 : i32
    %122 = tpu.assume_multiple %121, 2 : i32
    %123 = arith.index_cast %122 : i32 to index
    %c0_60 = arith.constant 0 : index
    %124 = vector.load %arg8[%123, %c0_60] : memref<16x64xf32, #tpu.memory_space<vmem>>, vector<2x64xf32>
    %cst_61 = arith.constant dense<0.000000e+00> : vector<2x64xf32>
    %125 = tpu.matmul %111, %7, %cst_61 {dimension_numbers = #tpu.dot_dimension_numbers<[1], [0], [0], [1], [0, 0, 1, 1], [], []>} : vector<2x64xf32>, vector<64x64xf32>, vector<2x64xf32> -> vector<2x64xf32>
    %126 = arith.addf %124, %125 : vector<2x64xf32>
    %127 = math.tanh %126 : vector<2x64xf32>
    %128 = vector.extract_strided_slice %127 {offsets = [0, 0], sizes = [2, 32], strides = [1, 1]} : vector<2x64xf32> to vector<2x32xf32>
    %129 = arith.index_cast %122 : i32 to index
    %c0_62 = arith.constant 0 : index
    %130 = vector.load %arg9[%129, %c0_62] : memref<16x32xf32, #tpu.memory_space<vmem>>, vector<2x32xf32>
    tpu.vector_store %arg9[%129, %c0_62], %128 {strides = array<i32>} : memref<16x32xf32, #tpu.memory_space<vmem>>, vector<2x32xf32>,
    %c7_i32_63 = arith.constant 7 : i32
    %131 = arith.subi %c7_i32_63, %c7_i32_58 : i32
    %c2_i32_64 = arith.constant 2 : i32
    %132 = arith.muli %131, %c2_i32_64 : i32
    %133 = tpu.assume_multiple %132, 2 : i32
    %134 = vector.extract_strided_slice %127 {offsets = [0, 32], sizes = [2, 32], strides = [1, 1]} : vector<2x64xf32> to vector<2x32xf32>
    %135 = arith.index_cast %133 : i32 to index
    %c0_65 = arith.constant 0 : index
    %136 = vector.load %arg10[%135, %c0_65] : memref<16x32xf32, #tpu.memory_space<vmem>>, vector<2x32xf32>
    tpu.vector_store %arg10[%135, %c0_65], %134 {strides = array<i32>} : memref<16x32xf32, #tpu.memory_space<vmem>>, vector<2x32xf32>,
    %c8_i32 = arith.constant 8 : i32
    %c0_66 = arith.constant 0 : index
    %c0_67 = arith.constant 0 : index
    %137 = vector.load %arg9[%c0_66, %c0_67] : memref<16x32xf32, #tpu.memory_space<vmem>>, vector<16x32xf32>
    %c0_68 = arith.constant 0 : index
    %c0_69 = arith.constant 0 : index
    %138 = vector.load %arg4[%c0_68, %c0_69] : memref<32x16xf32, #tpu.memory_space<vmem>>, vector<32x16xf32>
    %cst_70 = arith.constant dense<0.000000e+00> : vector<16x16xf32>
    %139 = tpu.matmul %137, %138, %cst_70 {dimension_numbers = #tpu.dot_dimension_numbers<[1], [0], [0], [1], [0, 0, 1, 1], [], []>} : vector<16x32xf32>, vector<32x16xf32>, vector<16x16xf32> -> vector<16x16xf32>
    %c0_71 = arith.constant 0 : index
    %c0_72 = arith.constant 0 : index
    %140 = vector.load %arg10[%c0_71, %c0_72] : memref<16x32xf32, #tpu.memory_space<vmem>>, vector<16x32xf32>
    %c0_73 = arith.constant 0 : index
    %c0_74 = arith.constant 0 : index
    %141 = vector.load %arg5[%c0_73, %c0_74] : memref<32x16xf32, #tpu.memory_space<vmem>>, vector<32x16xf32>
    %cst_75 = arith.constant dense<0.000000e+00> : vector<16x16xf32>
    %142 = tpu.matmul %140, %141, %cst_75 {dimension_numbers = #tpu.dot_dimension_numbers<[1], [0], [0], [1], [0, 0, 1, 1], [], []>} : vector<16x32xf32>, vector<32x16xf32>, vector<16x16xf32> -> vector<16x16xf32>
    %143 = arith.addf %139, %142 : vector<16x16xf32>
    %c0_76 = arith.constant 0 : index
    %c0_77 = arith.constant 0 : index
    %144 = vector.load %arg6[%c0_76, %c0_77] : memref<1x16xf32, #tpu.memory_space<vmem>>, vector<1x16xf32>
    %145 = vector.broadcast %144 : vector<1x16xf32> to vector<16x16xf32>
    %146 = arith.addf %143, %145 : vector<16x16xf32>
    %c0_78 = arith.constant 0 : index
    %c0_79 = arith.constant 0 : index
    %147 = vector.load %arg7[%c0_78, %c0_79] : memref<16x16xf32, #tpu.memory_space<vmem>>, vector<16x16xf32>
    tpu.vector_store %arg7[%c0_78, %c0_79], %146 {strides = array<i32>} : memref<16x16xf32, #tpu.memory_space<vmem>>, vector<16x16xf32>,
    return
  }
}

</mosaic_0001>

<bundles_post_ra>
// kernel: rnn_forward.1
= control target key start
LH: loop header
LB: loop body
LE: loop exit
PB: predicated region body
PF: predicated region fallthrough
CT: control target
= control target key end

     0   :  { %v1449_v3 = vmov 0.0|0.0   ;;  %vm1450_vm0 = vmmov 0   ;;  %v1451_v4 = vmov 0.0   ;;  %vm43_vm1 = vcmask 523264   ;;  %s1452_s13 = smov 96   ;;  %s1712_s1 = inlined_call_operand.vmem [shape: f32[64,64], index: 1, kind: input, shape index: {}]   ;;  %s1713_s3 = inlined_call_operand.vmem [shape: f32[64,64], index: 3, kind: input, shape index: {}]   ;;  %s1714_s0 = inlined_call_operand.vmem [shape: f32[16,64], index: 0, kind: input, shape index: {}]   ;;  %s1715_s2 = inlined_call_operand.vmem [shape: f32[1,64], index: 2, kind: input, shape index: {}]   ;;  %s1716_s5 = inlined_call_operand.vmem [shape: f32[32,16], index: 5, kind: input, shape index: {}]   ;;  %s1717_s4 = inlined_call_operand.vmem [shape: f32[32,16], index: 4, kind: input, shape index: {}]   ;;  %s1718_s6 = inlined_call_operand.vmem [shape: f32[1,16], index: 6, kind: input, shape index: {}]   ;;  %s1719_s7 = inlined_call_operand.vmem [shape: f32[16,16], index: 7, kind: output, shape index: {}]  }
   0x1   :  { %v28_v0 = vld [vmem:[%s1712_s1] sm:$0xff]  ;;  %v29_v1 = vld [vmem:[%s1712_s1 + $0x8] sm:$0xff]  ;;  %v30_v2 = vld [vmem:[%s1712_s1 + $0x10] sm:$0xff]  ;;  %1315 = vmatprep.subr.bf16.mxu1 %v1449_v3  ;;  %1141 = vmatprep.mubr.msk.f32.mxu1 %vm1450_vm0, %v1451_v4  ;;  %vm211_vm2 = vcmask 254976   ;;  %vm818_vm3 = vcmask 261120   ;;  %vm990_vm4 = vcmask 130048  }
   0x2   :  { %v1299_v5 = vpack.c.bf16 %v29_v1, %v28_v0  ;;  %v31_v6 = vld [vmem:[%s1712_s1 + $0x18] sm:$0xff]  ;;  %v32_v7 = vld [vmem:[%s1712_s1 + $0x20] sm:$0xff]  ;;  %v33_v9 = vld [vmem:[%s1712_s1 + $0x28] sm:$0xff] }
   0x3   :  { %v1303_v8 = vpack.c.bf16 %v31_v6, %v30_v2  ;;  %v127_v10 = vld [vmem:[%s1713_s3] sm:$0xff]  ;;  %v128_v11 = vld [vmem:[%s1713_s3 + $0x8] sm:$0xff]  ;;  %v129_v14 = vld [vmem:[%s1713_s3 + $0x10] sm:$0xff]  ;;  %v1307_v16 = vpack.c.bf16 %v33_v9, %v32_v7 }
   0x4   :  { %1300 = vmatprep.subr.bf16.mxu0 %v1299_v5  ;;  %v1520_v12 = vpack.c.bf16 %v128_v11, %v127_v10  ;;  %v26_v13 = vld [vmem:[%s1714_s0] sm:$0xff]  ;;  %v130_v15 = vld [vmem:[%s1713_s3 + $0x18] sm:$0xff]  ;;  %v34_v17 = vld [vmem:[%s1712_s1 + $0x30] sm:$0xff] }
   0x5   :  { %1302 = vmatpush3.bf16.msra.mxu0 %v1299_v5  ;;  %1122 = vmatprep.mubr.msk.f32.mxu0 %vm43_vm1, %v26_v13  ;;  %v1536_v18 = vpack.c.bf16 %v130_v15, %v129_v14  ;;  %v35_v19 = vld [vmem:[%s1712_s1 + $0x38] sm:$0xff]  ;;  %v131_v20 = vld [vmem:[%s1713_s3 + $0x20] sm:$0xff]  ;;  %v132_v21 = vld [vmem:[%s1713_s3 + $0x28] sm:$0xff] }
   0x6   :  { %1304 = vmatprep.subr.bf16.mxu0 %v1303_v8  ;;  %1317 = vmatpush3.bf16.msra.mxu1 %v1520_v12  ;;  %v1311_v22 = vpack.c.bf16 %v35_v19, %v34_v17  ;;  %v1549_v23 = vpack.c.bf16 %v132_v21, %v131_v20  ;;  %v133_v24 = vld [vmem:[%s1713_s3 + $0x30] sm:$0xff]  ;;  %v134_v25 = vld [vmem:[%s1713_s3 + $0x38] sm:$0xff]  ;;  %v27_v27 = vld [vmem:[%s1714_s0 + $0x8] sm:$0xff] }
   0x7   :  { %1318 = vmatprep.subr.bf16.mxu1 %v1449_v3  ;;  %v1559_v26 = vpack.c.bf16 %v134_v25, %v133_v24  ;;  %v997_v28 = vld [vmem:[%s1715_s2] ss:$0 sm:$0xff]  ;;  %v815_v15 = vld [vmem:[%s1716_s5 + $0x8] sm:$0xff]  ;;  %v816_v17 = vld [vmem:[%s1716_s5 + $0x10] sm:$0xff] }
   0x8   :  { %v814_v14 = vld [vmem:[%s1716_s5] sm:$0xff]  ;;  %v809_v21 = vld [vmem:[%s1717_s4 + $0x8] sm:$0xff] }
   0x9   :  { %1306 = vmatpush3.bf16.msra.mxu0 %v1303_v8  ;;  %v808_v20 = vld [vmem:[%s1717_s4] sm:$0xff] }
   0xa   :  { %1308 = vmatprep.subr.bf16.mxu0 %v1307_v16  ;;  %1320 = vmatpush3.bf16.msra.mxu1 %v1536_v18 }
   0xb   :  { %1321 = vmatprep.subr.bf16.mxu1 %v1449_v3 }
   0xd   :  { %1310 = vmatpush3.bf16.msra.mxu0 %v1307_v16  ;;  %v1411_v16 = vpack.c.bf16 %v815_v15, %v814_v14 }
   0xe   :  { %1312 = vmatprep.subr.bf16.mxu0 %v1311_v22  ;;  %1323 = vmatpush3.bf16.msra.mxu1 %v1549_v23 }
   0xf   :  { %1324 = vmatprep.subr.bf16.mxu1 %v1449_v3 }
  0x11   :  { %1314 = vmatpush3.bf16.msra.mxu0 %v1311_v22  ;;  %v1419_v22 = vpack.c.bf16 %v809_v21, %v808_v20 }
  0x12   :  { %1326 = vmatpush3.bf16.msra.mxu1 %v1559_v26  ;;  %1327 = vmatprep.subr.bf16.mxu0 %v1449_v3 }
  0x13   :  { %1339 = vmatprep.subr.bf16.mxu1 %v1449_v3 }
  0x14   :  { %1123 = vmatmul.mubr.msk.f32.vlgmr.msra.gmra.mrb[0].mxu0 %vm43_vm1, %v27_v27  ;;  %v810_v27 = vld [vmem:[%s1717_s4 + $0x10] sm:$0xff] }
  0x15   :  { %1142 = vmatmul.mubr.f32.vlgmr.msra.gmra.mrb[0].mxu1 %v1451_v4  ;;  %1329 = vmatpush3.bf16.msra.mxu0 %v1520_v12 }
  0x16   :  { %1330 = vmatprep.subr.bf16.mxu0 %v1449_v3  ;;  %1160 = vmatprep.mubr.msk.f32.mxu0 %vm1450_vm0, %v1451_v4 }
  0x17   :  { %1341 = vmatpush3.bf16.msra.mxu1 %v1520_v12  ;;  %1179 = vmatprep.mubr.msk.f32.mxu1 %vm1450_vm0, %v1451_v4 }
  0x18   :  { %1342 = vmatprep.subr.bf16.mxu1 %v1449_v3 }
  0x19   :  { %1332 = vmatpush3.bf16.msra.mxu0 %v1536_v18 }
  0x1a   :  { %1333 = vmatprep.subr.bf16.mxu0 %v1449_v3 }
  0x1b   :  { %1344 = vmatpush3.bf16.msra.mxu1 %v1536_v18 }
  0x1c   :  { %1345 = vmatprep.subr.bf16.mxu1 %v1449_v3 }
  0x1d   :  { %1335 = vmatpush3.bf16.msra.mxu0 %v1549_v23 }
  0x1e   :  { %1336 = vmatprep.subr.bf16.mxu0 %v1449_v3 }
  0x1f   :  { %1347 = vmatpush3.bf16.msra.mxu1 %v1549_v23 }
  0x20   :  { %1348 = vmatprep.subr.bf16.mxu1 %v1449_v3 }
  0x21   :  { %1338 = vmatpush3.bf16.msra.mxu0 %v1559_v26 }
  0x22   :  { %1351 = vmatprep.subr.bf16.mxu0 %v1449_v3 }
  0x23   :  { %1350 = vmatpush3.bf16.msra.mxu1 %v1559_v26 }
  0x24   :  { %1363 = vmatprep.subr.bf16.mxu1 %v1449_v3 }
  0xe7   :  { %v1124_v29 = vpop.f32.mrb[0].mxu0 }
  0xe8   :  { %v122_v30 = vadd.f32 %v1124_v29, %v997_v28  ;;  %v116_v31 = vpop.f32.mrb[1].mxu0  ;;  %v205_v32 = vpop.f32.mrb[0].mxu1 }
  0xe9   :  { %v117_v33 = vadd.f32 %v997_v28, %v116_v31  ;;  %v1143_v34 = vpop.f32.mrb[1].mxu1  ;;  %v811_v28 = vld [vmem:[%s1717_s4 + $0x18] sm:$0xff] }
  0xea   :  { %126 = vst.msk [vmem:[#allocation2 + $0x8] sm:$0xff] %vm43_vm1, %v122_v30  ;;  %v1423_v29 = vpack.c.bf16 %v811_v28, %v810_v27 }
  0xeb   :  { %125 = vst.msk [vmem:[#allocation2] sm:$0xff] %vm43_vm1, %v117_v33  ;;  %v1011_v33 = vld [vmem:[%s1718_s6] ss:$0 sm:$0xff] }
  0xf1   :  { %v472_v55 = vld [vmem:[#allocation2 + $0x8] sm:$0x3]  ;;  %v556_v61 = vld [vmem:[#allocation2 + $0xa] sm:$0x3]  ;;  %v724_v10 = vld [vmem:[#allocation2 + $0xe] sm:$0x3] }
  0xf2   :  { %v135_v35 = vld [vmem:[#allocation2] sm:$0x3]  ;;  %v220_v39 = vld [vmem:[#allocation2 + $0x2] sm:$0x3]  ;;  %v304_v45 = vld [vmem:[#allocation2 + $0x4] sm:$0x3] }
  0xf3   :  { %v209_v36 = vadd.f32 %v205_v32, %v135_v35  ;;  %v388_v50 = vld [vmem:[#allocation2 + $0x6] sm:$0x3] }
  0xf5   :  { %1433 = vtanh.f32 %v209_v36 }
  0xff   :  { %v1434_v37 = vpop.eup %1433 }
 0x100   :  { %212 = vst.msk [vmem:[#allocation3] sm:$0x3] %vm211_vm2, %v1434_v37  ;;  %214 = vrot.lane.b32.xlu0 %v1434_v37, %s1452_s13  ;;  %1161 = vmatmul.mubr.msk.f32.vlgmr.msra.gmra.mrb[2].mxu0 %vm43_vm1, %v1434_v37 }
 0x101   :  { %1353 = vmatpush3.bf16.msra.mxu0 %v1520_v12  ;;  %1198 = vmatprep.mubr.msk.f32.mxu0 %vm1450_vm0, %v1451_v4 }
 0x102   :  { %1354 = vmatprep.subr.bf16.mxu0 %v1449_v3 }
 0x105   :  { %1356 = vmatpush3.bf16.msra.mxu0 %v1536_v18 }
 0x106   :  { %1357 = vmatprep.subr.bf16.mxu0 %v1449_v3 }
 0x109   :  { %1359 = vmatpush3.bf16.msra.mxu0 %v1549_v23 }
 0x10a   :  { %1360 = vmatprep.subr.bf16.mxu0 %v1449_v3 }
 0x10d   :  { %1362 = vmatpush3.bf16.msra.mxu0 %v1559_v26 }
 0x10e   :  { %1375 = vmatprep.subr.bf16.mxu0 %v1449_v3 }
 0x172   :  { %v215_v38 = vpop.permute.xlu0 %214 }
 0x173   :  { %218 = vst.msk [vmem:[#allocation4 + $0xe] sm:$0x3] %vm211_vm2, %v215_v38 }
 0x1d3   :  { %v289_v40 = vpop.f32.mrb[2].mxu0 }
 0x1d4   :  { %v293_v41 = vadd.f32 %v289_v40, %v220_v39  ;;  %v1162_v42 = vpop.f32.mrb[3].mxu0 }
 0x1d6   :  { %1435 = vtanh.f32 %v293_v41 }
 0x1e0   :  { %v1436_v43 = vpop.eup %1435 }
 0x1e1   :  { %296 = vst.msk [vmem:[#allocation3 + $0x2] sm:$0x3] %vm211_vm2, %v1436_v43  ;;  %298 = vrot.lane.b32.xlu1 %v1436_v43, %s1452_s13  ;;  %1180 = vmatmul.mubr.msk.f32.vlgmr.msra.gmra.mrb[2].mxu1 %vm43_vm1, %v1436_v43 }
 0x1e2   :  { %1365 = vmatpush3.bf16.msra.mxu1 %v1520_v12  ;;  %1217 = vmatprep.mubr.msk.f32.mxu1 %vm1450_vm0, %v1451_v4 }
 0x1e3   :  { %1366 = vmatprep.subr.bf16.mxu1 %v1449_v3 }
 0x1e6   :  { %1368 = vmatpush3.bf16.msra.mxu1 %v1536_v18 }
 0x1e7   :  { %1369 = vmatprep.subr.bf16.mxu1 %v1449_v3 }
 0x1ea   :  { %1371 = vmatpush3.bf16.msra.mxu1 %v1549_v23 }
 0x1eb   :  { %1372 = vmatprep.subr.bf16.mxu1 %v1449_v3 }
 0x1ee   :  { %1374 = vmatpush3.bf16.msra.mxu1 %v1559_v26 }
 0x1ef   :  { %1387 = vmatprep.subr.bf16.mxu1 %v1449_v3 }
 0x253   :  { %v299_v44 = vpop.permute.xlu1 %298 }
 0x254   :  { %302 = vst.msk [vmem:[#allocation4 + $0xc] sm:$0x3] %vm211_vm2, %v299_v44 }
 0x2b4   :  { %v373_v46 = vpop.f32.mrb[2].mxu1 }
 0x2b5   :  { %v377_v47 = vadd.f32 %v373_v46, %v304_v45  ;;  %v1181_v48 = vpop.f32.mrb[3].mxu1 }
 0x2b7   :  { %1437 = vtanh.f32 %v377_v47 }
 0x2c1   :  { %v1438_v49 = vpop.eup %1437 }
 0x2c2   :  { %380 = vst.msk [vmem:[#allocation3 + $0x4] sm:$0x3] %vm211_vm2, %v1438_v49  ;;  %1199 = vmatmul.mubr.msk.f32.vlgmr.msra.gmra.mrb[4].mxu0 %vm43_vm1, %v1438_v49 }
 0x2c3   :  { %1377 = vmatpush3.bf16.msra.mxu0 %v1520_v12  ;;  %1236 = vmatprep.mubr.msk.f32.mxu0 %vm1450_vm0, %v1451_v4 }
 0x2c4   :  { %1378 = vmatprep.subr.bf16.mxu0 %v1449_v3 }
 0x2c7   :  { %1380 = vmatpush3.bf16.msra.mxu0 %v1536_v18 }
 0x2c8   :  { %1381 = vmatprep.subr.bf16.mxu0 %v1449_v3 }
 0x2cb   :  { %1383 = vmatpush3.bf16.msra.mxu0 %v1549_v23 }
 0x2cc   :  { %1384 = vmatprep.subr.bf16.mxu0 %v1449_v3 }
 0x2cf   :  { %1386 = vmatpush3.bf16.msra.mxu0 %v1559_v26 }
 0x2d0   :  { %1399 = vmatprep.subr.bf16.mxu0 %v1449_v3 }
 0x395   :  { %v457_v51 = vpop.f32.mrb[4].mxu0 }
 0x396   :  { %v461_v52 = vadd.f32 %v457_v51, %v388_v50  ;;  %v1200_v53 = vpop.f32.mrb[5].mxu0 }
 0x398   :  { %1439 = vtanh.f32 %v461_v52 }
 0x3a2   :  { %v1635_v54 = vpop.eup %1439 }
 0x3a3   :  { %464 = vst.msk [vmem:[#allocation3 + $0x6] sm:$0x3] %vm211_vm2, %v1635_v54  ;;  %1218 = vmatmul.mubr.msk.f32.vlgmr.msra.gmra.mrb[4].mxu1 %vm43_vm1, %v1635_v54 }
 0x3a4   :  { %1389 = vmatpush3.bf16.msra.mxu1 %v1520_v12  ;;  %1255 = vmatprep.mubr.msk.f32.mxu1 %vm1450_vm0, %v1451_v4 }
 0x3a5   :  { %1390 = vmatprep.subr.bf16.mxu1 %v1449_v3 }
 0x3a8   :  { %1392 = vmatpush3.bf16.msra.mxu1 %v1536_v18 }
 0x3a9   :  { %1393 = vmatprep.subr.bf16.mxu1 %v1449_v3 }
 0x3aa   :  { %v806_v31 = vld [vmem:[#allocation3] sm:$0xff] }
 0x3ac   :  { %1395 = vmatpush3.bf16.msra.mxu1 %v1549_v23 }
 0x3ad   :  { %1396 = vmatprep.subr.bf16.mxu1 %v1449_v3 }
 0x3b0   :  { %1398 = vmatpush3.bf16.msra.mxu1 %v1559_v26 }
 0x3b1   :  { %1412 = vmatprep.subr.bf16.mxu1 %v1411_v16 }
 0x476   :  { %v541_v56 = vpop.f32.mrb[4].mxu1 }
 0x477   :  { %v545_v57 = vadd.f32 %v541_v56, %v472_v55  ;;  %v1219_v58 = vpop.f32.mrb[5].mxu1 }
 0x479   :  { %1441 = vtanh.f32 %v545_v57 }
 0x483   :  { %v1442_v59 = vpop.eup %1441 }
 0x484   :  { %548 = vst.msk [vmem:[#allocation3 + $0x8] sm:$0x3] %vm211_vm2, %v1442_v59  ;;  %550 = vrot.lane.b32.xlu0 %v1442_v59, %s1452_s13  ;;  %1237 = vmatmul.mubr.msk.f32.vlgmr.msra.gmra.mrb[6].mxu0 %vm43_vm1, %v1442_v59 }
 0x485   :  { %1401 = vmatpush3.bf16.msra.mxu0 %v1520_v12  ;;  %1274 = vmatprep.mubr.msk.f32.mxu0 %vm1450_vm0, %v1451_v4  ;;  %v640_v4 = vld [vmem:[#allocation2 + $0xc] sm:$0x3] }
 0x486   :  { %1402 = vmatprep.subr.bf16.mxu0 %v1449_v3 }
 0x489   :  { %1404 = vmatpush3.bf16.msra.mxu0 %v1536_v18  ;;  %v817_v18 = vld [vmem:[%s1716_s5 + $0x18] sm:$0xff] }
 0x48a   :  { %1405 = vmatprep.subr.bf16.mxu0 %v1449_v3  ;;  %v1415_v19 = vpack.c.bf16 %v817_v18, %v816_v17 }
 0x48d   :  { %1407 = vmatpush3.bf16.msra.mxu0 %v1549_v23 }
 0x48e   :  { %1408 = vmatprep.subr.bf16.mxu0 %v1449_v3 }
 0x491   :  { %1410 = vmatpush3.bf16.msra.mxu0 %v1559_v26 }
 0x4f6   :  { %v551_v60 = vpop.permute.xlu0 %550 }
 0x4f7   :  { %554 = vst.msk [vmem:[#allocation4 + $0x6] sm:$0x3] %vm211_vm2, %v551_v60 }
 0x557   :  { %v625_v62 = vpop.f32.mrb[6].mxu0 }
 0x558   :  { %v629_v63 = vadd.f32 %v625_v62, %v556_v61  ;;  %v1238_v0 = vpop.f32.mrb[7].mxu0 }
 0x55a   :  { %1443 = vtanh.f32 %v629_v63 }
 0x564   :  { %v1444_v1 = vpop.eup %1443 }
 0x565   :  { %632 = vst.msk [vmem:[#allocation3 + $0xa] sm:$0x3] %vm211_vm2, %v1444_v1  ;;  %634 = vrot.lane.b32.xlu0 %v1444_v1, %s1452_s13  ;;  %1256 = vmatmul.mubr.msk.f32.vlgmr.msra.gmra.mrb[6].mxu1 %vm43_vm1, %v1444_v1 }
 0x566   :  { %1414 = vmatpush3.bf16.msra.mxu1 %v1411_v16 }
 0x567   :  { %1416 = vmatprep.subr.bf16.mxu1 %v1415_v19 }
 0x569   :  { %382 = vrot.lane.b32.xlu0 %v1438_v49, %s1452_s13 }
 0x56a   :  { %1418 = vmatpush3.bf16.msra.mxu1 %v1415_v19 }
 0x56b   :  { %1420 = vmatprep.subr.bf16.mxu1 %v1419_v22 }
 0x5d7   :  { %v635_v2 = vpop.permute.xlu0 %634 }
 0x5d8   :  { %638 = vst.msk [vmem:[#allocation4 + $0x4] sm:$0x3] %vm211_vm2, %v635_v2 }
 0x5db   :  { %v383_v3 = vpop.permute.xlu0 %382 }
 0x5dc   :  { %386 = vst.msk [vmem:[#allocation4 + $0xa] sm:$0x3] %vm211_vm2, %v383_v3 }
 0x638   :  { %v709_v5 = vpop.f32.mrb[6].mxu1 }
 0x639   :  { %v713_v6 = vadd.f32 %v709_v5, %v640_v4  ;;  %v1257_v7 = vpop.f32.mrb[7].mxu1 }
 0x63b   :  { %1445 = vtanh.f32 %v713_v6 }
 0x645   :  { %v1446_v8 = vpop.eup %1445 }
 0x646   :  { %716 = vst.msk [vmem:[#allocation3 + $0xc] sm:$0x3] %vm211_vm2, %v1446_v8  ;;  %718 = vrot.lane.b32.xlu1 %v1446_v8, %s1452_s13  ;;  %1275 = vmatmul.mubr.msk.f32.vlgmr.msra.gmra.mrb[8].mxu0 %vm43_vm1, %v1446_v8 }
 0x6b8   :  { %v719_v9 = vpop.permute.xlu1 %718 }
 0x6b9   :  { %722 = vst.msk [vmem:[#allocation4 + $0x2] sm:$0x3] %vm211_vm2, %v719_v9 }
 0x719   :  { %v793_v11 = vpop.f32.mrb[8].mxu0 }
 0x71a   :  { %v797_v12 = vadd.f32 %v793_v11, %v724_v10  ;;  %v1276_v13 = vpop.f32.mrb[9].mxu0 }
 0x71c   :  { %1447 = vtanh.f32 %v797_v12 }
 0x726   :  { %v1448_v23 = vpop.eup %1447 }
 0x727   :  { %800 = vst.msk [vmem:[#allocation3 + $0xe] sm:$0x3] %vm211_vm2, %v1448_v23  ;;  %802 = vrot.lane.b32.xlu1 %v1448_v23, %s1452_s13 }
 0x72b   :  { %466 = vrot.lane.b32.xlu1 %v1635_v54, %s1452_s13 }
 0x72e   :  { %v807_v32 = vld [vmem:[#allocation3 + $0x8] sm:$0xff] }
 0x799   :  { %v803_v24 = vpop.permute.xlu1 %802 }
 0x79a   :  { %805 = vst.msk [vmem:[#allocation4] sm:$0x3] %vm211_vm2, %v803_v24 }
 0x79d   :  { %v467_v25 = vpop.permute.xlu1 %466 }
 0x79e   :  { %470 = vst.msk [vmem:[#allocation4 + $0x8] sm:$0x3] %vm211_vm2, %v467_v25 }
 0x7a1   :  { %v812_v26 = vld [vmem:[#allocation4] sm:$0xff] }
 0x7a2   :  { %1285 = vmatprep.mubr.msk.f32.mxu1 %vm818_vm3, %v812_v26 }
 0x7a5   :  { %v813_v30 = vld [vmem:[#allocation4 + $0x8] sm:$0xff] }
 0x7a6   :  { %1286 = vmatmul.mubr.msk.f32.vlgmr.msra.gmra.mrb[8].mxu1 %vm818_vm3, %v813_v30 }
 0x7a7   :  { %1422 = vmatpush3.bf16.msra.mxu1 %v1419_v22  ;;  %1296 = vmatprep.mubr.msk.f32.mxu1 %vm818_vm3, %v806_v31 }
 0x7a8   :  { %1424 = vmatprep.subr.bf16.mxu1 %v1423_v29 }
 0x7ab   :  { %1426 = vmatpush3.bf16.msra.mxu1 %v1423_v29 }
 0x7ae   :  { %1297 = vmatmul.mubr.msk.f32.vlgmr.msra.gmra.mrb[8].mxu1 %vm818_vm3, %v807_v32 }
 0x881   :  { %v1298_v34 = vpop.f32.mrb[8].mxu1 }
 0x882   :  { %v989_v35 = vadd.f32 %v1298_v34, %v1011_v33  ;;  %v972_v36 = vpop.f32.mrb[9].mxu1 }
 0x883   :  { %v988_v37 = vadd.f32 %v1011_v33, %v972_v36 }
 0x884   :  { %992 = vst.msk [vmem:[%s1719_s7 + $0x8] sm:$0xff] %vm990_vm4, %v989_v35 }
 0x885   :  { %991 = vst.msk [vmem:[%s1719_s7] sm:$0xff] %vm990_vm4, %v988_v37 }

</bundles_post_ra>
